<compile_context>
chip_gen: v5e
topology: v5e:2x2
jax: 0.10.0
libtpu: 0.0.40
codegen_flags: <defaults>
</compile_context>

<pallas_src>
import functools
import math
import re

import jax
import jax.numpy as jnp
from jax.experimental import pallas as pl
from jax.experimental.pallas import tpu as pltpu

_SQRT_2_OVER_PI = math.sqrt(2.0 / math.pi)
_GELU_COEF = 0.044715
_MIN_PIPELINE_STEPS = 4  # enough steps for DMA/compute overlap + v7x 2-TC split


def _gelu_kernel(x_ref, o_ref, *, compute_dtype):
    x = x_ref[...].astype(compute_dtype)
    # 0.5 * x * (1 + tanh(sqrt(2/pi) * (x + 0.044715 * x^3)))
    # Polynomial factored as x * (c + (c*0.044715) * x^2); the constant product
    # is folded at trace time (one fewer VPU multiply per element).
    c = jnp.asarray(_SQRT_2_OVER_PI, compute_dtype)
    c2 = jnp.asarray(_SQRT_2_OVER_PI * _GELU_COEF, compute_dtype)
    half = jnp.asarray(0.5, compute_dtype)
    one = jnp.asarray(1.0, compute_dtype)
    t = x * x
    inner = x * (c + c2 * t)
    y = half * x * (one + jnp.tanh(inner))
    o_ref[...] = y.astype(o_ref.dtype)


def _round_up(a: int, b: int) -> int:
    return ((a + b - 1) // b) * b


def _round_down(a: int, b: int) -> int:
    return (a // b) * b


def _tpu_generation() -> int:
    """Best-effort TPU generation from device_kind ('TPU v5 lite' -> 5, ...)."""
    try:
        kind = jax.devices()[0].device_kind
    except Exception:  # pragma: no cover - defensive only
        return 0
    m = re.search(r"(\d+)", kind)
    return int(m.group(1)) if m else 0


def _gen_params(gen: int, dtype):
    """Per-generation block byte budget, scoped-VMEM override, compute dtype."""
    if gen >= 7:    # v7x: 64 MiB physical VMEM/TC, 3.2 TB/s HBM
        block_bytes, vmem_limit = 6 << 20, 48 << 20
    elif gen == 6:  # v6e: 128 MiB VMEM, 32 MiB default scoped limit
        block_bytes, vmem_limit = 4 << 20, 32 << 20
    else:           # v5e & older / unknown: 16 MiB default scoped limit
        block_bytes, vmem_limit = 2 << 20, None
    # bf16 VPU/EUP exist on v6e/v7x: keep bf16 compute there; v5e has no bf16
    # VPU/EUP so upcast to f32 (also for all non-bf16 inputs).
    if dtype == jnp.bfloat16 and gen >= 6:
        compute_dtype = jnp.bfloat16
    else:
        compute_dtype = jnp.float32
    return block_bytes, vmem_limit, compute_dtype


def _pick_lane_width(n: int, max_lane: int = 1024) -> int:
    """Largest lane width in {1024,512,256,128} that divides n (zero-copy path)."""
    for lane in (max_lane, 512, 256, 128):
        if n % lane == 0:
            return lane
    return max_lane  # ragged: pad only the tail (< max_lane elements)


def _pick_row_tile(rows: int, sublane_align: int, block_bytes: int,
                   lane_width: int, itemsize: int, gen: int) -> int:
    # Byte-budget tile, aligned to the dtype's sublane packing.
    budget = max(sublane_align,
                 _round_down(block_bytes // (lane_width * itemsize), sublane_align))
    # Keep >= _MIN_PIPELINE_STEPS grid steps when there is enough data, so the
    # pipeline overlaps DMA with compute and both v7x cores stay busy.
    if rows // _MIN_PIPELINE_STEPS >= sublane_align:
        budget = min(budget,
                     _round_down(rows // _MIN_PIPELINE_STEPS, sublane_align))
    if rows <= budget:
        # Single full-extent block (block dim == array dim: always legal).
        return rows
    rt = budget
    # v7x: nudge the tile down (bounded search) to make the grid even so the
    # "parallel" axis splits evenly across the two TensorCores.
    if gen >= 7:
        g = pl.cdiv(rows, rt)
        if g > 1 and g % 2 == 1:
            cand = rt - sublane_align
            lo = max(sublane_align, rt // 2)
            while cand >= lo:
                if pl.cdiv(rows, cand) % 2 == 0:
                    rt = cand
                    break
                cand -= sublane_align
    return rt


def gelu(x: jax.Array, *, lane_width: int = 1024) -> jax.Array:
    """Applies the GELU tanh approximation elementwise via a Pallas TPU kernel."""
    orig_shape = x.shape
    dtype = x.dtype
    n = x.size
    if n == 0:
        return x

    itemsize = jnp.dtype(dtype).itemsize
    # Sublane packing per dtype: 8 rows (f32), 16 (bf16), 32 (int8/fp8).
    sublane_align = max(8, 32 // itemsize)

    gen = _tpu_generation()
    block_bytes, vmem_limit, compute_dtype = _gen_params(gen, dtype)

    L = _pick_lane_width(n, lane_width)
    rows = pl.cdiv(n, L)
    n_pad = rows * L

    x_flat = x.reshape(-1)
    if n_pad != n:
        # Ragged sizes only: pad the tail up to one lane row (< L elements of
        # filler).  GELU(0) == 0 and the tail is sliced off again below.
        x_flat = jnp.pad(x_flat, (0, n_pad - n))
    x2d = x_flat.reshape(rows, L)

    rt = _pick_row_tile(rows, sublane_align, block_bytes, L, itemsize, gen)
    grid = (pl.cdiv(rows, rt),)  # partial last block is masked by Pallas

    cost = pl.CostEstimate(
        flops=8 * n_pad,
        transcendentals=n_pad,
        bytes_accessed=2 * n_pad * itemsize,
    )

    out2d = pl.pallas_call(
        functools.partial(_gelu_kernel, compute_dtype=compute_dtype),
        out_shape=jax.ShapeDtypeStruct((rows, L), dtype),
        grid_spec=pltpu.PrefetchScalarGridSpec(
            num_scalar_prefetch=0,
            grid=grid,
            in_specs=[pl.BlockSpec((rt, L), lambda i: (i, 0))],
            out_specs=pl.BlockSpec((rt, L), lambda i: (i, 0)),
        ),
        compiler_params=pltpu.CompilerParams(
            dimension_semantics=("parallel",),
            vmem_limit_bytes=vmem_limit,
        ),
        cost_estimate=cost,
    )(x2d)

    out_flat = out2d.reshape(-1)
    if n_pad != n:
        out_flat = out_flat[:n]
    return out_flat.reshape(orig_shape)


def _gelu_ref(x):
    # Pure-JAX reference mirroring the PyTorch module exactly (tanh approx).
    return 0.5 * x * (1.0 + jnp.tanh(
        jnp.sqrt(2.0 / jnp.pi) * (x + 0.044715 * jnp.power(x, 3))))


if __name__ == "__main__":
    key = jax.random.PRNGKey(0)

    # Small test shape consistent with the module: batch=2, seq=8, hidden=32.
    x = jax.random.normal(key, (2, 8, 32), dtype=jnp.float32)
    y = gelu(x)
    jax.block_until_ready(y)
    assert y.shape == x.shape and y.dtype == x.dtype
    assert jnp.allclose(y, _gelu_ref(x), atol=1e-5, rtol=1e-5), "mismatch (f32)"

    # Ragged / non-divisible shape: exercises the tail-pad + masked-block path.
    x2 = jax.random.normal(jax.random.PRNGKey(1), (3, 17, 257), dtype=jnp.float32)
    y2 = gelu(x2)
    jax.block_until_ready(y2)
    assert jnp.allclose(y2, _gelu_ref(x2), atol=1e-5, rtol=1e-5), "mismatch (ragged)"

    # Larger divisible shape: exercises the zero-copy, multi-step pipelined grid.
    x3 = jax.random.normal(jax.random.PRNGKey(2), (8, 256, 1024), dtype=jnp.float32)
    y3 = gelu(x3)
    jax.block_until_ready(y3)
    assert jnp.allclose(y3, _gelu_ref(x3), atol=1e-5, rtol=1e-5), "mismatch (large)"

    # bf16 input: exercises the generation-gated compute-dtype path.
    x4 = jax.random.normal(jax.random.PRNGKey(3), (4, 128, 1024),
                           dtype=jnp.bfloat16)
    y4 = gelu(x4)
    jax.block_until_ready(y4)
    ref4 = _gelu_ref(x4.astype(jnp.float32))
    assert jnp.allclose(y4.astype(jnp.float32), ref4, atol=5e-2, rtol=5e-2), \
        "mismatch (bf16)"

    print("KERNEL_OK")
</pallas_src>

<mosaic_0001>
module attributes {stable_mosaic.version = 11 : i64} {
  func.func @_gelu_kernel(%arg0: i32, %arg1: memref<1x512xf32, #tpu.memory_space<vmem>>, %arg2: memref<1x512xf32, #tpu.memory_space<vmem>>) attributes {dimension_semantics = [#tpu.dimension_semantics<parallel>], iteration_bounds = array<i64: 1>, scalar_prefetch = 0 : i64, scratch_operands = 0 : i64, tpu.core_type = #tpu.core_type<tc>, window_params = [{transform_indices = @transform_0, window_bounds = array<i64: 1, 512>}, {transform_indices = @transform_1, window_bounds = array<i64: 1, 512>}]} {
    %c0 = arith.constant 0 : index
    %c0_0 = arith.constant 0 : index
    %0 = vector.load %arg1[%c0, %c0_0] : memref<1x512xf32, #tpu.memory_space<vmem>>, vector<1x512xf32>
    %1 = arith.mulf %0, %0 : vector<1x512xf32>
    %cst = arith.constant 0.0356774069 : f32
    %2 = vector.broadcast %cst : f32 to vector<1x512xf32>
    %3 = arith.mulf %2, %1 : vector<1x512xf32>
    %cst_1 = arith.constant 0.797884583 : f32
    %4 = vector.broadcast %cst_1 : f32 to vector<1x512xf32>
    %5 = arith.addf %4, %3 : vector<1x512xf32>
    %6 = arith.mulf %0, %5 : vector<1x512xf32>
    %cst_2 = arith.constant 5.000000e-01 : f32
    %7 = vector.broadcast %cst_2 : f32 to vector<1x512xf32>
    %8 = arith.mulf %7, %0 : vector<1x512xf32>
    %9 = math.tanh %6 : vector<1x512xf32>
    %cst_3 = arith.constant 1.000000e+00 : f32
    %10 = vector.broadcast %cst_3 : f32 to vector<1x512xf32>
    %11 = arith.addf %10, %9 : vector<1x512xf32>
    %12 = arith.mulf %8, %11 : vector<1x512xf32>
    %c0_4 = arith.constant 0 : index
    %c0_5 = arith.constant 0 : index
    %13 = vector.load %arg2[%c0_4, %c0_5] : memref<1x512xf32, #tpu.memory_space<vmem>>, vector<1x512xf32>
    tpu.vector_store %arg2[%c0_4, %c0_5], %12 {strides = array<i32>} : memref<1x512xf32, #tpu.memory_space<vmem>>, vector<1x512xf32>,
    return
  }
  func.func @transform_0(%arg0: i32) -> (i32, i32) {
    %c0_i32 = arith.constant 0 : i32
    %c0_i32_0 = arith.constant 0 : i32
    return %arg0, %c0_i32 : i32, i32
  }
  func.func @transform_1(%arg0: i32) -> (i32, i32) {
    %c0_i32 = arith.constant 0 : i32
    %c0_i32_0 = arith.constant 0 : i32
    return %arg0, %c0_i32 : i32, i32
  }
}

</mosaic_0001>

<bundles_post_ra>
// kernel: tpu_custom_call.1
= control target key start
LH: loop header
LB: loop body
LE: loop exit
PB: predicated region body
PF: predicated region fallthrough
CT: control target
= control target key end

     0   :  { %6 = vsyncpa [#allocation3], 0  ;;  %s128_s0 = inlined_call_operand.hbm [shape: f32[1,512], index: 0, kind: input, shape index: {}]   ;;  %s129_s1 = inlined_call_operand.hbm [shape: f32[1,512], index: 1, kind: output, shape index: {}]  }
   0x1   :  { %7 = vsyncpa [#allocation4], 0  ;;  %s13_s8 = sshll.u32 %s128_s0, 4  ;;  %s110_s9 = smov [#allocation2]   ;;  %s14_s8 = int_to_ptr.hbm [resolvable:$true] %s13_s8 }
   0x2   :  { %s15_s10 = sshll.u32 %s110_s9, 4  ;;  %s16_s10 = int_to_ptr.vmem [resolvable:$true] %s15_s10 }
   0x3   :  { %18 = dma.hbm_to_vmem [thread:$0]  %s14_s8, 64, %s16_s10, [#allocation3]  }
   0x4   :  { %106 = dma.done.wait [#allocation3], 64  }
   0x5   :  { %107 = vsyncadd [#allocation3], 4294967232  ;;  %v23_v0 = vld [vmem:[#allocation2] sm:$0xf]  ;;  %v32_v5 = vlaneseq  ;;  %s111_s11 = smov [#allocation5]   ;;  %s44_s14 = sshll.u32 %s129_s1, 4  ;;  %s45_s14 = int_to_ptr.hbm [resolvable:$true] %s44_s14 }
   0x6   :  { %v24_v1 = vmul.f32 %v23_v0, %v23_v0  ;;  %v28_v6 = vmul.f32 0.5, %v23_v0  ;;  %s42_s12 = sshll.u32 %s111_s11, 4  ;;  %s43_s12 = int_to_ptr.vmem [resolvable:$true] %s42_s12 }
   0x7   :  { %vm34_vm0 = vcmp.lt.s32.totalorder %v32_v5, 512 }
   0x8   :  { %v25_v2 = vmul.f32 0.035677407, %v24_v1 }
   0xa   :  { %v26_v3 = vadd.f32 0.7978846, %v25_v2 }
   0xc   :  { %v27_v4 = vmul.f32 %v26_v3, %v23_v0 }
   0xe   :  { %56 = vtanh.f32 %v27_v4 }
  0x14   :  { %v57_v7 = vpop.eup %56 }
  0x15   :  { %v30_v8 = vadd.f32 1.0, %v57_v7 }
  0x17   :  { %v31_v9 = vmul.f32 %v30_v8, %v28_v6 }
  0x19   :  { %36 = vst.msk [vmem:[#allocation5] sm:$0xf] %vm34_vm0, %v31_v9 }
  0x1a   :  { %47 = dma.vmem_to_hbm [thread:$0]  %s43_s12, 64, %s45_s14, [#allocation4]  }
  0x1b   :  { %108 = dma.done.wait [#allocation4], 64  }
  0x1c   :  { %109 = vsyncadd [#allocation4], 4294967232 }
  0x1d   :  { %52 = vsyncpa [#allocation3], 1 }
  0x1e   :  { %53 = vsyncpa [#allocation4], 1 }

</bundles_post_ra>
